<compile_context>
chip_gen: v7x
topology: tpu7x:2x2x1
jax: 0.10.0
libtpu: 0.0.40
codegen_flags: <defaults>
</compile_context>

<pallas_src>
import functools

import jax
import jax.numpy as jnp
from jax.experimental import pallas as pl
from jax.experimental.pallas import tpu as pltpu


def _layernorm1d_kernel(x_ref, g_ref, b_ref, o_ref, *, eps):
    # x_ref: (1, C, tile_L) -- normalize over axis 1 (channels); L stays on lanes.
    x = x_ref[...].astype(jnp.float32)
    mean = jnp.mean(x, axis=1, keepdims=True)
    xc = x - mean
    var = jnp.mean(xc * xc, axis=1, keepdims=True)        # biased var (torch layer_norm)
    y = xc * jax.lax.rsqrt(var + eps)
    o_ref[...] = (y * g_ref[...] + b_ref[...]).astype(o_ref.dtype)


def layer_norm_1d(x, gamma, beta, *, eps=1e-5):
    """LayerNorm over the channel axis of an (N, C, L) tensor (PyTorch LayerNorm1d)."""
    N, C, L = x.shape

    # Pick the lane tile: largest 128-multiple (capped at 2048) whose f32 slab per
    # channel stack stays ~2 MiB, so double-buffered in/out + f32 temps are tiny.
    max_lane_bytes = 2 * 1024 * 1024
    tl_cap = max(128, min(2048, (max_lane_bytes // (4 * C)) // 128 * 128))

    if L <= tl_cap:
        # One lane tile covers all of L: full-axis block, no padding / slicing needed.
        tl, ntiles, x_p, Lp = L, 1, x, L
    else:
        tl = tl_cap
        Lp = ((L + tl - 1) // tl) * tl
        ntiles = Lp // tl
        x_p = jnp.pad(x, ((0, 0), (0, 0), (0, Lp - L))) if Lp != L else x

    g = gamma.reshape(1, C, 1).astype(jnp.float32)
    b = beta.reshape(1, C, 1).astype(jnp.float32)

    out = pl.pallas_call(
        functools.partial(_layernorm1d_kernel, eps=eps),
        out_shape=jax.ShapeDtypeStruct((N, C, Lp), x.dtype),
        grid=(N, ntiles),
        in_specs=[
            pl.BlockSpec((1, C, tl), lambda n, l: (n, 0, l)),
            pl.BlockSpec((1, C, 1), lambda n, l: (0, 0, 0)),
            pl.BlockSpec((1, C, 1), lambda n, l: (0, 0, 0)),
        ],
        out_specs=pl.BlockSpec((1, C, tl), lambda n, l: (n, 0, l)),
        compiler_params=pltpu.CompilerParams(
            dimension_semantics=("parallel", "parallel")),
    )(x_p, g, b)
    return out if Lp == L else out[:, :, :L]


def _reference(x, gamma, beta, eps=1e-5):
    """Pure-JAX reference matching the PyTorch module exactly."""
    xt = jnp.swapaxes(x, 1, -1).astype(jnp.float32)
    mean = jnp.mean(xt, axis=-1, keepdims=True)
    var = jnp.mean((xt - mean) ** 2, axis=-1, keepdims=True)
    y = (xt - mean) * jax.lax.rsqrt(var + eps) * gamma + beta
    return jnp.swapaxes(y, 1, -1).astype(x.dtype)


if __name__ == "__main__":
    key = jax.random.PRNGKey(0)
    kx, kg, kb = jax.random.split(key, 3)

    # Small shapes consistent with the module: (batch, channels, seq).
    # L intentionally not a multiple of 128 to exercise the full-axis (no-pad) block path.
    N, C, L = 2, 32, 200
    x = jax.random.normal(kx, (N, C, L), jnp.float32)
    gamma = 1.0 + 0.1 * jax.random.normal(kg, (C,), jnp.float32)
    beta = 0.1 * jax.random.normal(kb, (C,), jnp.float32)

    out = jax.block_until_ready(layer_norm_1d(x, gamma, beta))
    assert out.shape == (N, C, L), out.shape
    assert bool(jnp.all(jnp.isfinite(out)))
    ref = _reference(x, gamma, beta)
    assert bool(jnp.allclose(out, ref, atol=1e-4, rtol=1e-4)), float(
        jnp.max(jnp.abs(out - ref)))

    # Second (still small) case exercising the multi-tile / padded path (L > tile cap).
    L2 = 2048 + 200
    x2 = jax.random.normal(kx, (N, C, L2), jnp.float32)
    out2 = jax.block_until_ready(layer_norm_1d(x2, gamma, beta))
    ref2 = _reference(x2, gamma, beta)
    assert out2.shape == (N, C, L2), out2.shape
    assert bool(jnp.allclose(out2, ref2, atol=1e-4, rtol=1e-4)), float(
        jnp.max(jnp.abs(out2 - ref2)))

    print("KERNEL_OK")
</pallas_src>

<mosaic_0001>
module attributes {stable_mosaic.version = 11 : i64} {
  func.func @_layernorm1d_kernel(%arg0: i32, %arg1: i32, %arg2: memref<1x32x200xf32, #tpu.memory_space<vmem>>, %arg3: memref<1x32x1xf32, #tpu.memory_space<vmem>>, %arg4: memref<1x32x1xf32, #tpu.memory_space<vmem>>, %arg5: memref<1x32x200xf32, #tpu.memory_space<vmem>>) attributes {dimension_semantics = [#tpu.dimension_semantics<parallel>, #tpu.dimension_semantics<parallel>], iteration_bounds = array<i64: 2, 1>, scalar_prefetch = 0 : i64, scratch_operands = 0 : i64, tpu.core_type = #tpu.core_type<tc>, window_params = [{transform_indices = @transform_0, window_bounds = array<i64: 1, 32, 200>}, {pipeline_mode = #tpu.pipeline_mode<synchronous>, transform_indices = @transform_1, window_bounds = array<i64: 1, 32, 1>}, {pipeline_mode = #tpu.pipeline_mode<synchronous>, transform_indices = @transform_2, window_bounds = array<i64: 1, 32, 1>}, {transform_indices = @transform_3, window_bounds = array<i64: 1, 32, 200>}]} {
    %c0 = arith.constant 0 : index
    %c0_0 = arith.constant 0 : index
    %c0_1 = arith.constant 0 : index
    %0 = vector.load %arg2[%c0, %c0_0, %c0_1] : memref<1x32x200xf32, #tpu.memory_space<vmem>>, vector<1x32x200xf32>
    %cst = arith.constant dense<0.000000e+00> : vector<1x200xf32>
    %1 = vector.multi_reduction <add>, %0, %cst [1] : vector<1x32x200xf32> to vector<1x200xf32>
    %2 = vector.shape_cast %1 : vector<1x200xf32> to vector<1x1x200xf32>
    %cst_2 = arith.constant 3.200000e+01 : f32
    %3 = vector.broadcast %cst_2 : f32 to vector<1x1x200xf32>
    %4 = arith.divf %2, %3 : vector<1x1x200xf32>
    %5 = vector.broadcast %4 : vector<1x1x200xf32> to vector<1x32x200xf32>
    %6 = arith.subf %0, %5 : vector<1x32x200xf32>
    %7 = arith.mulf %6, %6 : vector<1x32x200xf32>
    %cst_3 = arith.constant dense<0.000000e+00> : vector<1x200xf32>
    %8 = vector.multi_reduction <add>, %7, %cst_3 [1] : vector<1x32x200xf32> to vector<1x200xf32>
    %9 = vector.shape_cast %8 : vector<1x200xf32> to vector<1x1x200xf32>
    %cst_4 = arith.constant 3.200000e+01 : f32
    %10 = vector.broadcast %cst_4 : f32 to vector<1x1x200xf32>
    %11 = arith.divf %9, %10 : vector<1x1x200xf32>
    %cst_5 = arith.constant 9.99999974E-6 : f32
    %12 = vector.broadcast %cst_5 : f32 to vector<1x1x200xf32>
    %13 = arith.addf %11, %12 : vector<1x1x200xf32>
    %14 = math.rsqrt %13 : vector<1x1x200xf32>
    %15 = vector.broadcast %14 : vector<1x1x200xf32> to vector<1x32x200xf32>
    %16 = arith.mulf %6, %15 : vector<1x32x200xf32>
    %c0_6 = arith.constant 0 : index
    %c0_7 = arith.constant 0 : index
    %c0_8 = arith.constant 0 : index
    %17 = vector.load %arg3[%c0_6, %c0_7, %c0_8] : memref<1x32x1xf32, #tpu.memory_space<vmem>>, vector<1x32x1xf32>
    %18 = vector.broadcast %17 : vector<1x32x1xf32> to vector<1x32x200xf32>
    %19 = arith.mulf %16, %18 : vector<1x32x200xf32>
    %c0_9 = arith.constant 0 : index
    %c0_10 = arith.constant 0 : index
    %c0_11 = arith.constant 0 : index
    %20 = vector.load %arg4[%c0_9, %c0_10, %c0_11] : memref<1x32x1xf32, #tpu.memory_space<vmem>>, vector<1x32x1xf32>
    %21 = vector.broadcast %20 : vector<1x32x1xf32> to vector<1x32x200xf32>
    %22 = arith.addf %19, %21 : vector<1x32x200xf32>
    %c0_12 = arith.constant 0 : index
    %c0_13 = arith.constant 0 : index
    %c0_14 = arith.constant 0 : index
    %23 = vector.load %arg5[%c0_12, %c0_13, %c0_14] : memref<1x32x200xf32, #tpu.memory_space<vmem>>, vector<1x32x200xf32>
    tpu.vector_store %arg5[%c0_12, %c0_13, %c0_14], %22 {strides = array<i32>} : memref<1x32x200xf32, #tpu.memory_space<vmem>>, vector<1x32x200xf32>,
    return
  }
  func.func @transform_0(%arg0: i32, %arg1: i32) -> (i32, i32, i32) {
    %c0_i32 = arith.constant 0 : i32
    %c0_i32_0 = arith.constant 0 : i32
    return %arg0, %c0_i32, %arg1 : i32, i32, i32
  }
  func.func @transform_1(%arg0: i32, %arg1: i32) -> (i32, i32, i32) {
    %c0_i32 = arith.constant 0 : i32
    %c0_i32_0 = arith.constant 0 : i32
    %c0_i32_1 = arith.constant 0 : i32
    %c0_i32_2 = arith.constant 0 : i32
    return %c0_i32, %c0_i32_0, %c0_i32_1 : i32, i32, i32
  }
  func.func @transform_2(%arg0: i32, %arg1: i32) -> (i32, i32, i32) {
    %c0_i32 = arith.constant 0 : i32
    %c0_i32_0 = arith.constant 0 : i32
    %c0_i32_1 = arith.constant 0 : i32
    %c0_i32_2 = arith.constant 0 : i32
    return %c0_i32, %c0_i32_0, %c0_i32_1 : i32, i32, i32
  }
  func.func @transform_3(%arg0: i32, %arg1: i32) -> (i32, i32, i32) {
    %c0_i32 = arith.constant 0 : i32
    %c0_i32_0 = arith.constant 0 : i32
    return %arg0, %c0_i32, %arg1 : i32, i32, i32
  }
}

</mosaic_0001>

<bundles_post_ra>
// kernel: tpu_custom_call.1
= control target key start
LH: loop header
LB: loop body
LE: loop exit
PB: predicated region body
PF: predicated region fallthrough
CT: control target
= control target key end

     0   :  { %8 = vsyncpa [#allocation3], 0  ;;  %s926_s0 = inlined_call_operand.hbm [shape: f32[2,32,200], index: 0, kind: input, shape index: {}]   ;;  %s927_s1 = inlined_call_operand.vmem [shape: f32[1,32,1], index: 1, kind: input, shape index: {}]   ;;  %s928_s2 = inlined_call_operand.vmem [shape: f32[1,32,1], index: 2, kind: input, shape index: {}]   ;;  %s929_s3 = inlined_call_operand.hbm [shape: f32[2,32,200], index: 3, kind: output, shape index: {}]  }
   0x1   :  { %10 = vsyncpa [#allocation3 + $0x1], 0 }
   0x2   :  { %11 = vsyncpa [#allocation4], 0 }
   0x3   :  { %13 = vsyncpa [#allocation4 + $0x1], 0  ;;  %s701_s12 = smov 0   ;;  %s703_s13 = smov 0  }
   0x4   :  { %s705_s14 = smov 0   ;;  %s707_s15 = smov 0  }
   0x5   :  { %s709_s16 = smov 0   ;;  %s711_s17 = smov 0  }
   0x6 LB: > { %s470_s18 = sadd.s32 4294967295, %s672_s17   ;;  %s471_s19 = sadd.s32 4294967294, %s672_s17   ;;  %s672_s17 = sphi %s711_s17, %s19_s17   ;;  %s668_s16 = sphi %s709_s16, %s944_s16   ;;  %s664_s15 = sphi %s707_s15, %s943_s15   ;;  %s660_s14 = sphi %s705_s14, %s942_s14   ;;  %s656_s13 = sphi %s703_s13, %s941_s13   ;;  %s652_s12 = sphi %s701_s12, %s940_s12  }
   0x7   : > { %s31_s20 = sadd.s32 1, %s668_s16  ;;  %s40_s21 = sadd.s32 1, %s660_s14 }
   0x8   : > { %p33_p0 = scmp.ge.s32.totalorder %s31_s20, 2  ;;  %p47_p1 = scmp.ne.s32.totalorder %s660_s14, %s656_s13 }
   0x9   : > { %p48_p2 = scmp.eq.s32.totalorder %s672_s17, 0  ;;  %p53_p3 = scmp.ne.s32.totalorder %s656_s13, %s652_s12 }
   0xa   : > { %s946_s20 = smov (%p33_p0, %s31_s20), 0  ;;  %p54_p5 = scmp.eq.s32.totalorder %s470_s18, 0 }
   0xb   : > { %p742_p4 = por %p48_p2, %p47_p1  ;;  %s35_s23 = ssub.s32 %s668_s16, %s946_s20 }
   0xc   : > { %p121_p6 = scmp.eq.s32.totalorder %s470_s18, 1  ;;  %p38_p7 = scmp.eq.s32.totalorder %s35_s23, 0 }
   0xd   : > { %p748_p8 = por %p54_p5, %p53_p3  ;;  %p127_p10 = scmp.eq.s32.totalorder %s471_s19, 1 }
   0xe   : > { %p752_p9 = por %p121_p6, %p47_p1  ;;  %p499_p13 = scmp.lt.s32.totalorder %s672_s17, 2 }
   0xf   : > { %s757_s26 = scalar_select %p38_p7, %s660_s14, %s40_s21  }
  0x10   : > { %s933_s25 = scalar_select %p752_p9, 1, 0 }
  0x11   : > { %p759_p11 = por %p127_p10, %p53_p3  ;;  %s153_s28 = sand.u32 1, %s660_s14  }
  0x12   : > { %s474_s29 = sshll.u32 %s153_s28, 6  ;;  %s485_s30 = sshll.u32 %s668_s16, 10 }
  0x13   : > { %s934_s27 = scalar_select %p759_p11, 1, 0 }
  0x14   : > { %s770_s6 = scalar_lea.hbm %s926_s0, %s485_s30  ;;  %s157_s7 = scalar_lea.vmem [#allocation2], %s474_s29 }
  0x15   : > { %s166_s8 = sshll.u32 %s157_s7, 4  ;;  %p776_p0 = pnand %p499_p13, %p742_p4  ;;  %s772_s8 = int_to_ptr.vmem [resolvable:$true] %s166_s8 }
  0x16   : > { %s781_s10 = scalar_lea.sflag [#allocation3], %s153_s28  ;;  %s560_s11 = scalar_lea.hbm %s770_s6, 1024 }
  0x17   : > { %p561_p2 = scmp.ne.s32.totalorder %s770_s6, %s560_s11  ;;  %p562_p3 = pneg %p776_p0 }
  0x18   : > { %s565_s21 = scalar_lea.hbm %s926_s0, 2048  ;;  %p566_p4 = scmp.lt.u32.totalorder %s770_s6, %s926_s0 }
  0x19   : > { %p563_p5 = pnand %p562_p3, %p561_p2  ;;  %p567_p7 = scmp.lt.u32.totalorder %s565_s21, %s560_s11 }
  0x1a   : > { %p569_p13 = scmp.lt.u32.totalorder %s560_s11, %s770_s6 }
  0x1b   : > { %p564_p6 = pneg %p563_p5  ;;  %p568_p10 = por %p567_p7, %p566_p4 }
  0x1d   : > { %p570_p12 = por %p569_p13, %p568_p10 }
  0x1f   : > { %p571_p1 = pnand %p570_p12, %p564_p6 }
  0x21   : > { %574 = shalt.err (!%p571_p1)
}
  0x22   : > { %s575_s28 = scalar_lea.vmem %s772_s8, 1024  ;;  %s674_s29 = smov [#allocation2]  }
  0x23   : > { %p576_p2 = scmp.ne.s32.totalorder %s772_s8, %s575_s28  ;;  %s580_s30 = sshll.u32 %s674_s29, 4  ;;  %s581_s30 = int_to_ptr.vmem [resolvable:$false] %s580_s30 }
  0x24   : > { %s582_s4 = scalar_lea.vmem %s581_s30, 2048  ;;  %p583_p9 = scmp.lt.s32.totalorder %s772_s8, %s581_s30 }
  0x25   : > { %p578_p5 = pnand %p576_p2, %p562_p3  ;;  %p584_p4 = scmp.lt.s32.totalorder %s582_s4, %s575_s28 }
  0x27   : > { %p579_p11 = pneg %p578_p5  ;;  %p585_p7 = por %p584_p4, %p583_p9 }
  0x29   : > { %p586_p10 = pnand %p585_p7, %p579_p11 }
  0x2b   : > { %589 = shalt.err (!%p586_p10)
}
  0x2c   : > { %s675_s5 = smov 256   ;;  %s676_s7 = smov 16  }
  0x2d   : > { %494 = dma.hbm_to_vmem [thread:$0]  (!%p776_p0), %s770_s6, 1024, %s772_s8, %s781_s10, %s675_s5, %s675_s5, %s676_s7  }
  0x2e   : > { %p174_p12 = scmp.lt.s32.totalorder %s672_s17, 3  ;;  %p936_p1 = scmp.ge.s32.totalorder %s672_s17, 1 }
  0x30   : > { %p175_p3 = pnand %p936_p1, %p174_p12 }
  0x31   : > { %s813_s11 = sand.u32 (!%p175_p3), 1, %s656_s13  }
  0x32   : > { %178 = sbr.rel (%p175_p3) target bundleno = 218 (0xda), region = 32  ;;  %s478_s18 = sshll.u32 (!%p175_p3), %s813_s11, 6 }
  0x33   : > { %s181_s19 = scalar_lea.sflag (!%p175_p3), [#allocation3], %s813_s11  ;;  %s819_s21 = scalar_lea.vmem (!%p175_p3), [#allocation2], %s478_s18 }
  0x39   : > { %643 = dma.done.wait (%p748_p8), %s181_s19, 1024  }
  0x3a   : > { %645 = vsyncadd (%p748_p8), %s181_s19, 4294966272  ;;  %v677_v0 = vmov 0   ;;  %v297_v1 = vld [vmem:[%s927_s1 + $0x10] sm:$0xff]  ;;  %v295_v2 = vld [vmem:[%s927_s1] sm:$0xff]  ;;  %vm226_vm0 = vcmask 588800   ;;  %s486_s10 = sshll.u32 %s664_s15, 10 }
  0x3b   : > { %555 = vset.pattern.permute.xlu1 %v677_v0  ;;  %554 = vset.pattern.permute.xlu0 %v677_v0  ;;  %v298_v3 = vld [vmem:[%s927_s1 + $0x18] sm:$0xff]  ;;  %v296_v4 = vld [vmem:[%s927_s1 + $0x8] sm:$0xff]  ;;  %v327_v6 = vld [vmem:[%s928_s2] sm:$0xff]  ;;  %s875_s22 = scalar_lea.hbm %s929_s3, %s486_s10  ;;  %s368_s23 = scalar_lea.sflag [#allocation4], %s813_s11 }
  0x3c   : > { %311 = vperm.xlu1 %555, %v297_v1   ;;  %301 = vperm.xlu0 %554, %v295_v2   ;;  %v328_v5 = vld [vmem:[%s928_s2 + $0x8] sm:$0xff]  ;;  %v330_v7 = vld [vmem:[%s928_s2 + $0x18] sm:$0xff]  ;;  %v329_v8 = vld [vmem:[%s928_s2 + $0x10] sm:$0xff]  ;;  %p937_p9 = scmp.ne.s32.totalorder %s933_s25, 0  ;;  %s678_s28 = smov [#allocation5]  }
  0x3d   : > { %v210_v9 = vld [vmem:[%s819_s21 + $0x8] sm:$0xff]  ;;  %v212_v10 = vld [vmem:[%s819_s21 + $0x18] sm:$0xff]  ;;  %v209_v14 = vld [vmem:[%s819_s21] sm:$0xff]  ;;  %s594_s29 = sshll.u32 %s678_s28, 4  ;;  %s595_s29 = int_to_ptr.vmem [resolvable:$false] %s594_s29 }
  0x3e   : > { %v227_v11 = vsel %vm226_vm0, %v210_v9, 0.0  ;;  %v228_v12 = vsel %vm226_vm0, %v212_v10, 0.0  ;;  %v214_v13 = vld [vmem:[%s819_s21 + $0x28] sm:$0xff]  ;;  %v211_v15 = vld [vmem:[%s819_s21 + $0x10] sm:$0xff]  ;;  %v216_v18 = vld [vmem:[%s819_s21 + $0x38] sm:$0xff]  ;;  %s596_s30 = scalar_lea.vmem %s595_s29, 2048 }
  0x3f   : > { %v229_v16 = vadd.f32 %v228_v12, %v227_v11  ;;  %v230_v17 = vsel %vm226_vm0, %v214_v13, 0.0  ;;  %v217_v19 = vadd.f32 %v211_v15, %v209_v14  ;;  %v213_v20 = vld [vmem:[%s819_s21 + $0x20] sm:$0xff]  ;;  %v232_v22 = vsel %vm226_vm0, %v216_v18, 0.0  ;;  %v215_v24 = vld [vmem:[%s819_s21 + $0x30] sm:$0xff]  ;;  %s206_s21 = scalar_lea.vmem [#allocation5], %s478_s18 }
  0x40   : > { %316 = vperm.xlu1 %555, %v298_v3   ;;  %306 = vperm.xlu0 %554, %v296_v4   ;;  %s383_s9 = sshll.u32 %s206_s21, 4  ;;  %s868_s9 = int_to_ptr.vmem [resolvable:$true] %s383_s9 }
  0x41   : > { %v231_v21 = vadd.f32 %v230_v17, %v229_v16  ;;  %v218_v23 = vadd.f32 %v217_v19, %v213_v20  ;;  %s590_s24 = scalar_lea.vmem %s868_s9, 1024  ;;  %p597_p6 = scmp.lt.s32.totalorder %s868_s9, %s595_s29 }
  0x42   : > { %p591_p8 = scmp.ne.s32.totalorder %s868_s9, %s590_s24  ;;  %p598_p13 = scmp.lt.s32.totalorder %s596_s30, %s590_s24 }
  0x43   : > { %v233_v25 = vadd.f32 %v232_v22, %v231_v21  ;;  %v219_v26 = vadd.f32 %v218_v23, %v215_v24 }
  0x44   : > { %338 = vperm.xlu1 %555, %v328_v5   ;;  %333 = vperm.xlu0 %554, %v327_v6   ;;  %p592_p11 = pnand %p591_p8, %p937_p9  ;;  %p599_p2 = por %p598_p13, %p597_p6 }
  0x45   : > { %v234_v27 = vrot.slane %v233_v25, 4  ;;  %v220_v28 = vrot.slane %v219_v26, 4 }
  0x46   : > { %p593_p0 = pneg %p592_p11 }
  0x47   : > { %v235_v29 = vadd.f32 %v234_v27, %v233_v25  ;;  %v221_v30 = vadd.f32 %v220_v28, %v219_v26 }
  0x48   : > { %348 = vperm.xlu1 %555, %v330_v7   ;;  %343 = vperm.xlu0 %554, %v329_v8   ;;  %p600_p5 = pnand %p599_p2, %p593_p0 }
  0x49   : > { %v236_v31 = vrot.slane %v235_v29, 2  ;;  %v222_v32 = vrot.slane %v221_v30, 2 }
  0x4b   : > { %v237_v33 = vadd.f32 %v236_v31, %v235_v29  ;;  %v223_v34 = vadd.f32 %v222_v32, %v221_v30 }
  0x4d   : > { %v238_v35 = vrot.slane %v237_v33, 1  ;;  %v224_v36 = vrot.slane %v223_v34, 1 }
  0x4f   : > { %v239_v37 = vadd.f32 %v238_v35, %v237_v33  ;;  %v225_v38 = vadd.f32 %v224_v36, %v223_v34 }
  0x51   : > { %v242_v39 = vmul.f32 0.03125, %v239_v37  ;;  %v241_v40 = vmul.f32 0.03125, %v225_v38 }
  0x53   : > { %v244_v41 = vsub.f32 %v210_v9, %v242_v39  ;;  %v246_v42 = vsub.f32 %v212_v10, %v242_v39  ;;  %v243_v43 = vsub.f32 %v209_v14, %v241_v40  ;;  %v245_v44 = vsub.f32 %v211_v15, %v241_v40 }
  0x54   : > { %v248_v45 = vsub.f32 %v214_v13, %v242_v39  ;;  %v247_v48 = vsub.f32 %v213_v20, %v241_v40  ;;  %v250_v51 = vsub.f32 %v216_v18, %v242_v39  ;;  %v249_v55 = vsub.f32 %v215_v24, %v241_v40 }
  0x55   : > { %v252_v46 = vmul.f32 %v244_v41, %v244_v41  ;;  %v254_v47 = vmul.f32 %v246_v42, %v246_v42  ;;  %v251_v49 = vmul.f32 %v243_v43, %v243_v43  ;;  %v253_v50 = vmul.f32 %v245_v44, %v245_v44 }
  0x56   : > { %v256_v52 = vmul.f32 %v248_v45, %v248_v45  ;;  %v255_v56 = vmul.f32 %v247_v48, %v247_v48  ;;  %v258_v59 = vmul.f32 %v250_v51, %v250_v51  ;;  %v257_v61 = vmul.f32 %v249_v55, %v249_v55 }
  0x57   : > { %v268_v53 = vsel %vm226_vm0, %v252_v46, 0.0  ;;  %v269_v54 = vsel %vm226_vm0, %v254_v47, 0.0  ;;  %v259_v57 = vadd.f32 %v253_v50, %v251_v49 }
  0x58   : > { %v270_v58 = vadd.f32 %v269_v54, %v268_v53  ;;  %v271_v60 = vsel %vm226_vm0, %v256_v52, 0.0  ;;  %v273_v0 = vsel %vm226_vm0, %v258_v59, 0.0 }
  0x59   : > { %v260_v62 = vadd.f32 %v259_v57, %v255_v56 }
  0x5a   : > { %v272_v63 = vadd.f32 %v271_v60, %v270_v58 }
  0x5b   : > { %v261_v1 = vadd.f32 %v260_v62, %v257_v61 }
  0x5c   : > { %v274_v2 = vadd.f32 %v273_v0, %v272_v63 }
  0x5d   : > { %v262_v3 = vrot.slane %v261_v1, 4 }
  0x5e   : > { %v275_v4 = vrot.slane %v274_v2, 4 }
  0x5f   : > { %v263_v5 = vadd.f32 %v262_v3, %v261_v1 }
  0x60   : > { %v276_v6 = vadd.f32 %v275_v4, %v274_v2 }
  0x61   : > { %v264_v7 = vrot.slane %v263_v5, 2 }
  0x62   : > { %v277_v8 = vrot.slane %v276_v6, 2 }
  0x63   : > { %v265_v9 = vadd.f32 %v264_v7, %v263_v5 }
  0x64   : > { %v278_v10 = vadd.f32 %v277_v8, %v276_v6 }
  0x65   : > { %v266_v11 = vrot.slane %v265_v9, 1 }
  0x66   : > { %v279_v12 = vrot.slane %v278_v10, 1 }
  0x67   : > { %v267_v13 = vadd.f32 %v266_v11, %v265_v9 }
  0x68   : > { %v280_v14 = vadd.f32 %v279_v12, %v278_v10 }
  0x69   : > { %v281_v15 = vmul.f32 0.03125, %v267_v13 }
  0x6a   : > { %v282_v16 = vmul.f32 0.03125, %v280_v14 }
  0x6b   : > { %v283_v17 = vadd.f32 1e-05, %v281_v15 }
  0x6c   : > { %v284_v18 = vadd.f32 1e-05, %v282_v16 }
  0x6d   : > { %556 = vrsqrt.f32 %v283_v17 }
  0x6e   : > { %558 = vrsqrt.f32 %v284_v18 }
  0x77   : > { %v557_v19 = vpop.eup %556 }
  0x78   : > { %v559_v20 = vpop.eup %558  ;;  %v287_v23 = vmul.f32 %v557_v19, %v243_v43  ;;  %v289_v25 = vmul.f32 %v557_v19, %v245_v44  ;;  %v291_v29 = vmul.f32 %v557_v19, %v247_v48  ;;  %v293_v31 = vmul.f32 %v557_v19, %v249_v55 }
  0x79   : > { %v288_v24 = vmul.f32 %v559_v20, %v244_v41  ;;  %v290_v26 = vmul.f32 %v559_v20, %v246_v42  ;;  %v292_v30 = vmul.f32 %v559_v20, %v248_v45  ;;  %v294_v32 = vmul.f32 %v559_v20, %v250_v51 }
  0xbb   : > { %v312_v21 = vpop.permute.xlu1 %311  ;;  %v302_v22 = vpop.permute.xlu0 %301 }
  0xbc   : > { %v319_v33 = vmul.f32 %v302_v22, %v287_v23  ;;  %v320_v34 = vmul.f32 %v302_v22, %v288_v24  ;;  %v323_v43 = vmul.f32 %v312_v21, %v291_v29  ;;  %v324_v44 = vmul.f32 %v312_v21, %v292_v30 }
  0xbf   : > { %v317_v27 = vpop.permute.xlu1 %316  ;;  %v307_v28 = vpop.permute.xlu0 %306 }
  0xc0   : > { %v321_v35 = vmul.f32 %v307_v28, %v289_v25  ;;  %v322_v36 = vmul.f32 %v307_v28, %v290_v26  ;;  %v325_v46 = vmul.f32 %v317_v27, %v293_v31  ;;  %v326_v45 = vmul.f32 %v317_v27, %v294_v32 }
  0xc3   : > { %v339_v37 = vpop.permute.xlu1 %338  ;;  %v334_v38 = vpop.permute.xlu0 %333 }
  0xc4   : > { %v353_v39 = vadd.f32 %v339_v37, %v321_v35  ;;  %v354_v40 = vadd.f32 %v339_v37, %v322_v36  ;;  %v351_v41 = vadd.f32 %v334_v38, %v319_v33  ;;  %v352_v42 = vadd.f32 %v334_v38, %v320_v34 }
  0xc6   : > { %361 = vst [vmem:[%s206_s21 + $0x10] sm:$0xff] %v353_v39  ;;  %362 = vst.msk [vmem:[%s206_s21 + $0x18] sm:$0xff] %vm226_vm0, %v354_v40 }
  0xc7   : > { %359 = vst [vmem:[%s206_s21] sm:$0xff] %v351_v41  ;;  %360 = vst.msk [vmem:[%s206_s21 + $0x8] sm:$0xff] %vm226_vm0, %v352_v42  ;;  %v349_v47 = vpop.permute.xlu1 %348  ;;  %v344_v48 = vpop.permute.xlu0 %343 }
  0xc8   : > { %v357_v49 = vadd.f32 %v349_v47, %v325_v46  ;;  %v358_v50 = vadd.f32 %v349_v47, %v326_v45  ;;  %v355_v51 = vadd.f32 %v344_v48, %v323_v43  ;;  %v356_v52 = vadd.f32 %v344_v48, %v324_v44 }
  0xca   : > { %365 = vst [vmem:[%s206_s21 + $0x30] sm:$0xff] %v357_v49  ;;  %366 = vst.msk [vmem:[%s206_s21 + $0x38] sm:$0xff] %vm226_vm0, %v358_v50 }
  0xcb   : > { %363 = vst [vmem:[%s206_s21 + $0x20] sm:$0xff] %v355_v51  ;;  %364 = vst.msk [vmem:[%s206_s21 + $0x28] sm:$0xff] %vm226_vm0, %v356_v52 }
  0xcc   : > { %603 = shalt.err (!%p600_p5)
}
  0xcd   : > { %s604_s4 = scalar_lea.hbm %s875_s22, 1024  ;;  %s608_s19 = scalar_lea.hbm %s929_s3, 2048 }
  0xce   : > { %p605_p4 = scmp.ne.s32.totalorder %s875_s22, %s604_s4  ;;  %p609_p12 = scmp.lt.u32.totalorder %s875_s22, %s929_s3 }
  0xcf   : > { %p610_p1 = scmp.lt.u32.totalorder %s608_s19, %s604_s4  ;;  %p612_p8 = scmp.lt.u32.totalorder %s604_s4, %s875_s22 }
  0xd0   : > { %p606_p7 = pnand %p605_p4, %p937_p9 }
  0xd1   : > { %p611_p3 = por %p610_p1, %p609_p12 }
  0xd2   : > { %p607_p10 = pneg %p606_p7 }
  0xd3   : > { %p613_p11 = por %p612_p8, %p611_p3 }
  0xd5   : > { %p614_p0 = pnand %p613_p11, %p607_p10 }
  0xd7   : > { %617 = shalt.err (!%p614_p0)
}
  0xd8   : > { %s679_s21 = smov 256   ;;  %s680_s10 = smov 16  }
  0xd9   : > { %489 = dma.vmem_to_hbm [thread:$0]  (%p937_p9), %s868_s9, 1024, %s875_s22, %s368_s23, %s679_s21, %s679_s21, %s680_s10  }
  0xda PF: > { %s398_s18 = sand.u32 1, %s652_s12   ;;  %p938_p6 = scmp.ne.s32.totalorder %s934_s27, 0 }
  0xdb   : > { %p939_p13 = scmp.ge.s32.totalorder %s672_s17, 2  ;;  %s399_s15 = scalar_lea.sflag [#allocation4], %s398_s18 }
  0xdd   : > { %p496_p2 = pnand %p939_p13, %p938_p6 }
  0xdf   : > { %647 = dma.done.wait (!%p496_p2), %s399_s15, 1024  }
  0xe0   : > { %649 = vsyncadd (!%p496_p2), %s399_s15, 4294966272  ;;  %s19_s17 = sadd.s32 1, %s672_s17   ;;  %s940_s12 = smov %s656_s13 }
  0xe1   : > { %p16_p5 = scmp.ge.s32.totalorder %s19_s17, 4   ;;  %s941_s13 = smov %s660_s14 }
  0xe2   : > { %s942_s14 = smov %s757_s26  ;;  %s943_s15 = smov %s668_s16 }
  0xe3   : > { %s944_s16 = smov %s946_s20  ;;  %18 = sbr.rel (!%p16_p5) target bundleno = 6 (0x6), region = 77 }
  0xea   :  { %404 = vsyncpa [#allocation3], 1 }
  0xeb   :  { %406 = vsyncpa [#allocation3 + $0x1], 1 }
  0xec   :  { %407 = vsyncpa [#allocation4], 1 }
  0xed   :  { %409 = vsyncpa [#allocation4 + $0x1], 1 }

</bundles_post_ra>
